<compile_context>
chip_gen: v7x
topology: tpu7x:2x2x1
jax: 0.10.0
libtpu: 0.0.40
codegen_flags: <defaults>
</compile_context>

<pallas_src>
import numpy as np
import jax
import jax.numpy as jnp
from jax.experimental import pallas as pl
from jax.experimental.pallas import tpu as pltpu


# --------------------------------------------------------------------------
# torch-exact bilinear (scale_factor=2, align_corners=False) interpolation
# --------------------------------------------------------------------------
def _bilinear_matrix(n_in: int) -> np.ndarray:
    """up = M @ x along one axis, matching nn.Upsample(scale_factor=2, 'bilinear')."""
    n_out = 2 * n_in
    m = np.zeros((n_out, n_in), np.float32)
    for p in range(n_out):
        src = max(0.5 * (p + 0.5) - 0.5, 0.0)
        i0 = min(int(np.floor(src)), n_in - 1)
        i1 = min(i0 + 1, n_in - 1)
        f = src - i0
        m[p, i0] += 1.0 - f
        m[p, i1] += f
    return m


def _row_shift(mat: np.ndarray, d: int) -> np.ndarray:
    """out[i] = mat[i + d] if 0 <= i + d < n else 0  (conv zero-padding fold)."""
    out = np.zeros_like(mat)
    if d == 0:
        out[:] = mat
    elif d == 1:
        out[:-1] = mat[1:]
    elif d == -1:
        out[1:] = mat[:-1]
    else:
        raise ValueError(d)
    return out


def _pick_batch_block(n: int, h: int, target_rows: int = 256) -> int:
    """Largest divisor of n with b*h <= target_rows (MXU row occupancy)."""
    best = 1
    for bb in range(1, n + 1):
        if n % bb == 0 and bb * h <= target_rows:
            best = bb
    return best


def _pick_tile_n(cw_out: int, cap: int = 2048) -> int:
    """Output-column tile: full width if small, else a 128-multiple divisor <= cap."""
    if cw_out <= cap:
        return cw_out
    for t in range(cap, 127, -128):
        if cw_out % t == 0:
            return t
    return cw_out


# --------------------------------------------------------------------------
# Kernel: fused bilinear-upsample + 3x3 conv + streamed BN sums
# --------------------------------------------------------------------------
def _upconv_matmul_kernel(xp_ref, uhs_ref, r_ref, y_ref, s_ref, ss_ref):
    b_blk, h, cw_in = xp_ref.shape
    _, hup, tile_n = y_ref.shape

    # Stage 1: batch-folded channel/width-mix matmuls, M = b_blk * h rows.
    xp_flat = xp_ref[...].reshape(b_blk * h, cw_in)
    ts = [jnp.dot(xp_flat, r_ref[ky], preferred_element_type=jnp.float32)
          for ky in range(3)]                       # each (b_blk*h, tile_n)

    uhs = [uhs_ref[ky] for ky in range(3)]          # hoist constant loads

    # Stage 2: height-upsample matmuls per batch element; taps accumulate into a
    # single target (v7x MRB-friendly).  One wide lane-dense store per element.
    for bb in range(b_blk):
        acc = jnp.dot(uhs[0], ts[0][bb * h:(bb + 1) * h, :],
                      preferred_element_type=jnp.float32)
        for ky in range(1, 3):
            acc = acc + jnp.dot(uhs[ky], ts[ky][bb * h:(bb + 1) * h, :],
                                preferred_element_type=jnp.float32)
        y_ref[bb] = acc
        # streamed BatchNorm statistics (per batch element, per packed lane)
        s_ref[bb] = jnp.sum(acc, axis=0, keepdims=True)
        ss_ref[bb] = jnp.sum(acc * acc, axis=0, keepdims=True)


# --------------------------------------------------------------------------
# Wrapper
# --------------------------------------------------------------------------
@jax.jit
def up_conv_forward(x, w, b, gamma, beta, eps=1e-5):
    # Conv bias `b` is exactly cancelled by batch-statistics BatchNorm, so it is
    # not used in the forward pass (fold it into running_mean if that is ever
    # materialized).
    del b
    N, C_in, H, W = x.shape
    C_out = w.shape[0]
    Hup, Wup = 2 * H, 2 * W
    CW_in, CW_out = C_in * W, C_out * Wup

    # constant interpolation matrices with conv-padding shifts folded in
    uh = _bilinear_matrix(H)                                      # (Hup, H)
    uw = _bilinear_matrix(W)                                      # (Wup, W)
    uhs = np.stack([_row_shift(uh, ky - 1) for ky in range(3)])   # (3, Hup, H)
    uws = np.stack([_row_shift(uw, kx - 1) for kx in range(3)])   # (3, Wup, W)

    # input repack (layout plumbing): NCHW -> (N, H, C_in*W)
    x32 = x.astype(jnp.float32)
    xp = jnp.transpose(x32, (0, 2, 1, 3)).reshape(N, H, CW_in)

    # weight prepack: R[ky][ci*W + w, co*Wup + q] = sum_kx uws[kx, q, w] * wconv[co, ci, ky, kx]
    # TODO(synk): for large W, factor Uw out of R (per-tap width matmul + small
    # channel-mix) instead of this dense fold; fold kept while CW_in fits one MXU K pass.
    r = jnp.einsum('kxw,oiyk->yiwox', jnp.asarray(uws), w.astype(jnp.float32),
                   precision=jax.lax.Precision.HIGHEST).reshape(3, CW_in, CW_out)

    b_blk = _pick_batch_block(N, H)
    tile_n = _pick_tile_n(CW_out)
    grid = (N // b_blk, CW_out // tile_n)

    y_packed, ssum, ssq = pl.pallas_call(
        _upconv_matmul_kernel,
        out_shape=(
            jax.ShapeDtypeStruct((N, Hup, CW_out), jnp.float32),
            jax.ShapeDtypeStruct((N, 1, CW_out), jnp.float32),
            jax.ShapeDtypeStruct((N, 1, CW_out), jnp.float32),
        ),
        grid=grid,
        in_specs=[
            pl.BlockSpec((b_blk, H, CW_in), lambda n, j: (n, 0, 0)),   # packed input
            pl.BlockSpec((3, Hup, H), lambda n, j: (0, 0, 0)),         # shifted Uh (const)
            pl.BlockSpec((3, CW_in, tile_n), lambda n, j: (0, 0, j)),  # prepacked weights
        ],
        out_specs=(
            pl.BlockSpec((b_blk, Hup, tile_n), lambda n, j: (n, 0, j)),  # conv out (packed)
            pl.BlockSpec((b_blk, 1, tile_n), lambda n, j: (n, 0, j)),    # per-batch sums
            pl.BlockSpec((b_blk, 1, tile_n), lambda n, j: (n, 0, j)),    # per-batch sum-sq
        ),
        compiler_params=pltpu.CompilerParams(
            dimension_semantics=("parallel", "parallel")),
    )(xp, jnp.asarray(uhs), r)

    # tiny cross-batch reduction + BN scale/shift on (C_out,) vectors (plain JAX)
    cnt = float(N * Hup * Wup)
    ch_sum = jnp.sum(ssum.reshape(N, C_out, Wup), axis=(0, 2))
    ch_sq = jnp.sum(ssq.reshape(N, C_out, Wup), axis=(0, 2))
    mean = ch_sum / cnt
    var = jnp.maximum(ch_sq / cnt - mean * mean, 0.0)      # biased batch variance
    scale = gamma.astype(jnp.float32) * jax.lax.rsqrt(var + eps)
    shift = beta.astype(jnp.float32) - mean * scale
    # TODO(synk): BatchNorm running_mean/running_var updates (training-time side
    # effect) are not materialized; they do not affect the forward output.

    # BN normalize + ReLU fused with the unpack transpose by XLA (single pass over y)
    y4 = y_packed.reshape(N, Hup, C_out, Wup)
    z4 = jnp.maximum(y4 * scale[None, None, :, None] + shift[None, None, :, None], 0.0)
    return z4.transpose(0, 2, 1, 3)                          # NCHW


# --------------------------------------------------------------------------
# Pure-JAX reference (same torch semantics, full precision)
# --------------------------------------------------------------------------
def up_conv_reference(x, w, b, gamma, beta, eps=1e-5):
    H, W = x.shape[2], x.shape[3]
    uh = jnp.asarray(_bilinear_matrix(H))
    uw = jnp.asarray(_bilinear_matrix(W))
    up = jnp.einsum('ph,nchw,qw->ncpq', uh, x, uw,
                    precision=jax.lax.Precision.HIGHEST)
    y = jax.lax.conv_general_dilated(
        up, w, window_strides=(1, 1), padding=((1, 1), (1, 1)),
        dimension_numbers=('NCHW', 'OIHW', 'NCHW'),
        precision=jax.lax.Precision.HIGHEST)
    y = y + b[None, :, None, None]
    mean = jnp.mean(y, axis=(0, 2, 3), keepdims=True)
    var = jnp.mean(jnp.square(y - mean), axis=(0, 2, 3), keepdims=True)
    z = (y - mean) * jax.lax.rsqrt(var + eps)
    z = z * gamma[None, :, None, None] + beta[None, :, None, None]
    return jnp.maximum(z, 0.0)


if __name__ == "__main__":
    key = jax.random.PRNGKey(0)
    kx, kw, kb, kg, kbt = jax.random.split(key, 5)

    N, C_in, C_out, H, W = 2, 4, 8, 16, 16
    x = jax.random.normal(kx, (N, C_in, H, W), jnp.float32)
    w = 0.1 * jax.random.normal(kw, (C_out, C_in, 3, 3), jnp.float32)
    b = 0.1 * jax.random.normal(kb, (C_out,), jnp.float32)
    gamma = 1.0 + 0.1 * jax.random.normal(kg, (C_out,), jnp.float32)
    beta = 0.1 * jax.random.normal(kbt, (C_out,), jnp.float32)

    out = up_conv_forward(x, w, b, gamma, beta)
    out = jax.block_until_ready(out)

    ref = up_conv_reference(x, w, b, gamma, beta)
    assert out.shape == (N, C_out, 2 * H, 2 * W)
    max_err = float(jnp.max(jnp.abs(out - ref)))
    # tolerance accommodates MXU f32 pass-count differences vs the HIGHEST-precision
    # reference (BN-normalized outputs are O(1))
    assert max_err < 1e-2, f"max_err={max_err}"
    print("KERNEL_OK")
</pallas_src>

<mosaic_0001>
module attributes {stable_mosaic.version = 11 : i64} {
  func.func @_upconv_matmul_kernel(%arg0: i32, %arg1: i32, %arg2: memref<2x16x64xf32, #tpu.memory_space<vmem>>, %arg3: memref<3x32x16xf32, #tpu.memory_space<vmem>>, %arg4: memref<3x64x256xf32, #tpu.memory_space<vmem>>, %arg5: memref<2x32x256xf32, #tpu.memory_space<vmem>>, %arg6: memref<2x1x256xf32, #tpu.memory_space<vmem>>, %arg7: memref<2x1x256xf32, #tpu.memory_space<vmem>>) attributes {dimension_semantics = [#tpu.dimension_semantics<parallel>, #tpu.dimension_semantics<parallel>], iteration_bounds = array<i64: 1, 1>, scalar_prefetch = 0 : i64, scratch_operands = 0 : i64, tpu.core_type = #tpu.core_type<tc>, window_params = [{transform_indices = @transform_0, window_bounds = array<i64: 2, 16, 64>}, {pipeline_mode = #tpu.pipeline_mode<synchronous>, transform_indices = @transform_1, window_bounds = array<i64: 3, 32, 16>}, {transform_indices = @transform_2, window_bounds = array<i64: 3, 64, 256>}, {transform_indices = @transform_3, window_bounds = array<i64: 2, 32, 256>}, {transform_indices = @transform_4, window_bounds = array<i64: 2, 1, 256>}, {transform_indices = @transform_5, window_bounds = array<i64: 2, 1, 256>}]} {
    %c0 = arith.constant 0 : index
    %c0_0 = arith.constant 0 : index
    %c0_1 = arith.constant 0 : index
    %0 = vector.load %arg2[%c0, %c0_0, %c0_1] : memref<2x16x64xf32, #tpu.memory_space<vmem>>, vector<2x16x64xf32>
    %1 = vector.shape_cast %0 : vector<2x16x64xf32> to vector<32x64xf32>
    %c0_2 = arith.constant 0 : index
    %c0_3 = arith.constant 0 : index
    %c0_4 = arith.constant 0 : index
    %2 = vector.load %arg4[%c0_2, %c0_3, %c0_4] : memref<3x64x256xf32, #tpu.memory_space<vmem>>, vector<1x64x256xf32>
    %3 = vector.shape_cast %2 : vector<1x64x256xf32> to vector<64x256xf32>
    %cst = arith.constant dense<0.000000e+00> : vector<32x256xf32>
    %4 = tpu.matmul %1, %3, %cst {dimension_numbers = #tpu.dot_dimension_numbers<[1], [0], [0], [1], [0, 0, 1, 1], [], []>} : vector<32x64xf32>, vector<64x256xf32>, vector<32x256xf32> -> vector<32x256xf32>
    %c1 = arith.constant 1 : index
    %c0_5 = arith.constant 0 : index
    %c0_6 = arith.constant 0 : index
    %5 = vector.load %arg4[%c1, %c0_5, %c0_6] : memref<3x64x256xf32, #tpu.memory_space<vmem>>, vector<1x64x256xf32>
    %6 = vector.shape_cast %5 : vector<1x64x256xf32> to vector<64x256xf32>
    %cst_7 = arith.constant dense<0.000000e+00> : vector<32x256xf32>
    %7 = tpu.matmul %1, %6, %cst_7 {dimension_numbers = #tpu.dot_dimension_numbers<[1], [0], [0], [1], [0, 0, 1, 1], [], []>} : vector<32x64xf32>, vector<64x256xf32>, vector<32x256xf32> -> vector<32x256xf32>
    %c2 = arith.constant 2 : index
    %c0_8 = arith.constant 0 : index
    %c0_9 = arith.constant 0 : index
    %8 = vector.load %arg4[%c2, %c0_8, %c0_9] : memref<3x64x256xf32, #tpu.memory_space<vmem>>, vector<1x64x256xf32>
    %9 = vector.shape_cast %8 : vector<1x64x256xf32> to vector<64x256xf32>
    %cst_10 = arith.constant dense<0.000000e+00> : vector<32x256xf32>
    %10 = tpu.matmul %1, %9, %cst_10 {dimension_numbers = #tpu.dot_dimension_numbers<[1], [0], [0], [1], [0, 0, 1, 1], [], []>} : vector<32x64xf32>, vector<64x256xf32>, vector<32x256xf32> -> vector<32x256xf32>
    %c0_11 = arith.constant 0 : index
    %c0_12 = arith.constant 0 : index
    %c0_13 = arith.constant 0 : index
    %11 = vector.load %arg3[%c0_11, %c0_12, %c0_13] : memref<3x32x16xf32, #tpu.memory_space<vmem>>, vector<1x32x16xf32>
    %12 = vector.shape_cast %11 : vector<1x32x16xf32> to vector<32x16xf32>
    %c1_14 = arith.constant 1 : index
    %c0_15 = arith.constant 0 : index
    %c0_16 = arith.constant 0 : index
    %13 = vector.load %arg3[%c1_14, %c0_15, %c0_16] : memref<3x32x16xf32, #tpu.memory_space<vmem>>, vector<1x32x16xf32>
    %14 = vector.shape_cast %13 : vector<1x32x16xf32> to vector<32x16xf32>
    %c2_17 = arith.constant 2 : index
    %c0_18 = arith.constant 0 : index
    %c0_19 = arith.constant 0 : index
    %15 = vector.load %arg3[%c2_17, %c0_18, %c0_19] : memref<3x32x16xf32, #tpu.memory_space<vmem>>, vector<1x32x16xf32>
    %16 = vector.shape_cast %15 : vector<1x32x16xf32> to vector<32x16xf32>
    %17 = vector.extract_strided_slice %4 {offsets = [0, 0], sizes = [16, 256], strides = [1, 1]} : vector<32x256xf32> to vector<16x256xf32>
    %cst_20 = arith.constant dense<0.000000e+00> : vector<32x256xf32>
    %18 = tpu.matmul %12, %17, %cst_20 {dimension_numbers = #tpu.dot_dimension_numbers<[1], [0], [0], [1], [0, 0, 1, 1], [], []>} : vector<32x16xf32>, vector<16x256xf32>, vector<32x256xf32> -> vector<32x256xf32>
    %19 = vector.extract_strided_slice %7 {offsets = [0, 0], sizes = [16, 256], strides = [1, 1]} : vector<32x256xf32> to vector<16x256xf32>
    %cst_21 = arith.constant dense<0.000000e+00> : vector<32x256xf32>
    %20 = tpu.matmul %14, %19, %cst_21 {dimension_numbers = #tpu.dot_dimension_numbers<[1], [0], [0], [1], [0, 0, 1, 1], [], []>} : vector<32x16xf32>, vector<16x256xf32>, vector<32x256xf32> -> vector<32x256xf32>
    %21 = arith.addf %18, %20 : vector<32x256xf32>
    %22 = vector.extract_strided_slice %10 {offsets = [0, 0], sizes = [16, 256], strides = [1, 1]} : vector<32x256xf32> to vector<16x256xf32>
    %cst_22 = arith.constant dense<0.000000e+00> : vector<32x256xf32>
    %23 = tpu.matmul %16, %22, %cst_22 {dimension_numbers = #tpu.dot_dimension_numbers<[1], [0], [0], [1], [0, 0, 1, 1], [], []>} : vector<32x16xf32>, vector<16x256xf32>, vector<32x256xf32> -> vector<32x256xf32>
    %24 = arith.addf %21, %23 : vector<32x256xf32>
    %c0_23 = arith.constant 0 : index
    %c0_24 = arith.constant 0 : index
    %c0_25 = arith.constant 0 : index
    %25 = vector.load %arg5[%c0_23, %c0_24, %c0_25] : memref<2x32x256xf32, #tpu.memory_space<vmem>>, vector<1x32x256xf32>
    %26 = vector.shape_cast %25 : vector<1x32x256xf32> to vector<32x256xf32>
    %27 = vector.shape_cast %24 : vector<32x256xf32> to vector<1x32x256xf32>
    tpu.vector_store %arg5[%c0_23, %c0_24, %c0_25], %27 {strides = array<i32>} : memref<2x32x256xf32, #tpu.memory_space<vmem>>, vector<1x32x256xf32>,
    %cst_26 = arith.constant dense<0.000000e+00> : vector<256xf32>
    %28 = vector.multi_reduction <add>, %24, %cst_26 [0] : vector<32x256xf32> to vector<256xf32>
    %29 = vector.shape_cast %28 : vector<256xf32> to vector<1x256xf32>
    %c0_27 = arith.constant 0 : index
    %c0_28 = arith.constant 0 : index
    %c0_29 = arith.constant 0 : index
    %30 = vector.load %arg6[%c0_27, %c0_28, %c0_29] : memref<2x1x256xf32, #tpu.memory_space<vmem>>, vector<1x1x256xf32>
    %31 = vector.shape_cast %30 : vector<1x1x256xf32> to vector<1x256xf32>
    %32 = vector.shape_cast %29 : vector<1x256xf32> to vector<1x1x256xf32>
    tpu.vector_store %arg6[%c0_27, %c0_28, %c0_29], %32 {strides = array<i32>} : memref<2x1x256xf32, #tpu.memory_space<vmem>>, vector<1x1x256xf32>,
    %33 = arith.mulf %24, %24 : vector<32x256xf32>
    %cst_30 = arith.constant dense<0.000000e+00> : vector<256xf32>
    %34 = vector.multi_reduction <add>, %33, %cst_30 [0] : vector<32x256xf32> to vector<256xf32>
    %35 = vector.shape_cast %34 : vector<256xf32> to vector<1x256xf32>
    %c0_31 = arith.constant 0 : index
    %c0_32 = arith.constant 0 : index
    %c0_33 = arith.constant 0 : index
    %36 = vector.load %arg7[%c0_31, %c0_32, %c0_33] : memref<2x1x256xf32, #tpu.memory_space<vmem>>, vector<1x1x256xf32>
    %37 = vector.shape_cast %36 : vector<1x1x256xf32> to vector<1x256xf32>
    %38 = vector.shape_cast %35 : vector<1x256xf32> to vector<1x1x256xf32>
    tpu.vector_store %arg7[%c0_31, %c0_32, %c0_33], %38 {strides = array<i32>} : memref<2x1x256xf32, #tpu.memory_space<vmem>>, vector<1x1x256xf32>,
    %39 = vector.extract_strided_slice %4 {offsets = [16, 0], sizes = [16, 256], strides = [1, 1]} : vector<32x256xf32> to vector<16x256xf32>
    %cst_34 = arith.constant dense<0.000000e+00> : vector<32x256xf32>
    %40 = tpu.matmul %12, %39, %cst_34 {dimension_numbers = #tpu.dot_dimension_numbers<[1], [0], [0], [1], [0, 0, 1, 1], [], []>} : vector<32x16xf32>, vector<16x256xf32>, vector<32x256xf32> -> vector<32x256xf32>
    %41 = vector.extract_strided_slice %7 {offsets = [16, 0], sizes = [16, 256], strides = [1, 1]} : vector<32x256xf32> to vector<16x256xf32>
    %cst_35 = arith.constant dense<0.000000e+00> : vector<32x256xf32>
    %42 = tpu.matmul %14, %41, %cst_35 {dimension_numbers = #tpu.dot_dimension_numbers<[1], [0], [0], [1], [0, 0, 1, 1], [], []>} : vector<32x16xf32>, vector<16x256xf32>, vector<32x256xf32> -> vector<32x256xf32>
    %43 = arith.addf %40, %42 : vector<32x256xf32>
    %44 = vector.extract_strided_slice %10 {offsets = [16, 0], sizes = [16, 256], strides = [1, 1]} : vector<32x256xf32> to vector<16x256xf32>
    %cst_36 = arith.constant dense<0.000000e+00> : vector<32x256xf32>
    %45 = tpu.matmul %16, %44, %cst_36 {dimension_numbers = #tpu.dot_dimension_numbers<[1], [0], [0], [1], [0, 0, 1, 1], [], []>} : vector<32x16xf32>, vector<16x256xf32>, vector<32x256xf32> -> vector<32x256xf32>
    %46 = arith.addf %43, %45 : vector<32x256xf32>
    %c1_37 = arith.constant 1 : index
    %c0_38 = arith.constant 0 : index
    %c0_39 = arith.constant 0 : index
    %47 = vector.load %arg5[%c1_37, %c0_38, %c0_39] : memref<2x32x256xf32, #tpu.memory_space<vmem>>, vector<1x32x256xf32>
    %48 = vector.shape_cast %47 : vector<1x32x256xf32> to vector<32x256xf32>
    %49 = vector.shape_cast %46 : vector<32x256xf32> to vector<1x32x256xf32>
    tpu.vector_store %arg5[%c1_37, %c0_38, %c0_39], %49 {strides = array<i32>} : memref<2x32x256xf32, #tpu.memory_space<vmem>>, vector<1x32x256xf32>,
    %cst_40 = arith.constant dense<0.000000e+00> : vector<256xf32>
    %50 = vector.multi_reduction <add>, %46, %cst_40 [0] : vector<32x256xf32> to vector<256xf32>
    %51 = vector.shape_cast %50 : vector<256xf32> to vector<1x256xf32>
    %c1_41 = arith.constant 1 : index
    %c0_42 = arith.constant 0 : index
    %c0_43 = arith.constant 0 : index
    %52 = vector.load %arg6[%c1_41, %c0_42, %c0_43] : memref<2x1x256xf32, #tpu.memory_space<vmem>>, vector<1x1x256xf32>
    %53 = vector.shape_cast %52 : vector<1x1x256xf32> to vector<1x256xf32>
    %54 = vector.shape_cast %51 : vector<1x256xf32> to vector<1x1x256xf32>
    tpu.vector_store %arg6[%c1_41, %c0_42, %c0_43], %54 {strides = array<i32>} : memref<2x1x256xf32, #tpu.memory_space<vmem>>, vector<1x1x256xf32>,
    %55 = arith.mulf %46, %46 : vector<32x256xf32>
    %cst_44 = arith.constant dense<0.000000e+00> : vector<256xf32>
    %56 = vector.multi_reduction <add>, %55, %cst_44 [0] : vector<32x256xf32> to vector<256xf32>
    %57 = vector.shape_cast %56 : vector<256xf32> to vector<1x256xf32>
    %c1_45 = arith.constant 1 : index
    %c0_46 = arith.constant 0 : index
    %c0_47 = arith.constant 0 : index
    %58 = vector.load %arg7[%c1_45, %c0_46, %c0_47] : memref<2x1x256xf32, #tpu.memory_space<vmem>>, vector<1x1x256xf32>
    %59 = vector.shape_cast %58 : vector<1x1x256xf32> to vector<1x256xf32>
    %60 = vector.shape_cast %57 : vector<1x256xf32> to vector<1x1x256xf32>
    tpu.vector_store %arg7[%c1_45, %c0_46, %c0_47], %60 {strides = array<i32>} : memref<2x1x256xf32, #tpu.memory_space<vmem>>, vector<1x1x256xf32>,
    return
  }
  func.func @transform_0(%arg0: i32, %arg1: i32) -> (i32, i32, i32) {
    %c0_i32 = arith.constant 0 : i32
    %c0_i32_0 = arith.constant 0 : i32
    %c0_i32_1 = arith.constant 0 : i32
    return %arg0, %c0_i32, %c0_i32_0 : i32, i32, i32
  }
  func.func @transform_1(%arg0: i32, %arg1: i32) -> (i32, i32, i32) {
    %c0_i32 = arith.constant 0 : i32
    %c0_i32_0 = arith.constant 0 : i32
    %c0_i32_1 = arith.constant 0 : i32
    %c0_i32_2 = arith.constant 0 : i32
    return %c0_i32, %c0_i32_0, %c0_i32_1 : i32, i32, i32
  }
  func.func @transform_2(%arg0: i32, %arg1: i32) -> (i32, i32, i32) {
    %c0_i32 = arith.constant 0 : i32
    %c0_i32_0 = arith.constant 0 : i32
    %c0_i32_1 = arith.constant 0 : i32
    return %c0_i32, %c0_i32_0, %arg1 : i32, i32, i32
  }
  func.func @transform_3(%arg0: i32, %arg1: i32) -> (i32, i32, i32) {
    %c0_i32 = arith.constant 0 : i32
    %c0_i32_0 = arith.constant 0 : i32
    return %arg0, %c0_i32, %arg1 : i32, i32, i32
  }
  func.func @transform_4(%arg0: i32, %arg1: i32) -> (i32, i32, i32) {
    %c0_i32 = arith.constant 0 : i32
    %c0_i32_0 = arith.constant 0 : i32
    return %arg0, %c0_i32, %arg1 : i32, i32, i32
  }
  func.func @transform_5(%arg0: i32, %arg1: i32) -> (i32, i32, i32) {
    %c0_i32 = arith.constant 0 : i32
    %c0_i32_0 = arith.constant 0 : i32
    return %arg0, %c0_i32, %arg1 : i32, i32, i32
  }
}

</mosaic_0001>

<bundles_post_ra>
// kernel: up_conv_forward.1
= control target key start
LH: loop header
LB: loop body
LE: loop exit
PB: predicated region body
PF: predicated region fallthrough
CT: control target
= control target key end

     0   :  { %v1351_v3 = vmov 0.0   ;;  %vm37_vm0 = vcmask 523264   ;;  %vm365_vm1 = vcmask 130048   ;;  %s1731_s2 = inlined_call_operand.vmem [shape: f32[3,64,256], index: 2, kind: input, shape index: {}]   ;;  %s1732_s0 = inlined_call_operand.vmem [shape: f32[2,16,64], index: 0, kind: input, shape index: {}]   ;;  %s1733_s1 = inlined_call_operand.vmem [shape: f32[3,32,16], index: 1, kind: input, shape index: {}]   ;;  %s1734_s3 = inlined_call_operand.vmem [shape: f32[2,32,256], index: 3, kind: output, shape index: {0}]   ;;  %s1735_s4 = inlined_call_operand.vmem [shape: f32[2,1,256], index: 4, kind: output, shape index: {1}]   ;;  %s1736_s5 = inlined_call_operand.vmem [shape: f32[2,1,256], index: 5, kind: output, shape index: {2}]  }
   0x1   :  { %v1156_v0 = vld [vmem:[%s1731_s2 + $0x88] sm:$0xff]  ;;  %v1158_v1 = vld [vmem:[%s1731_s2 + $0x98] sm:$0xff]  ;;  %v1155_v2 = vld [vmem:[%s1731_s2 + $0x80] sm:$0xff]  ;;  %220 = vmatprep.mubr.f32.mxu1 %v1351_v3  ;;  %114 = vmatprep.mubr.f32.mxu0 %v1351_v3 }
   0x2   :  { %v1253_v4 = vpack.c.bf16 %v1158_v1, %v1156_v0  ;;  %v1157_v5 = vld [vmem:[%s1731_s2 + $0x90] sm:$0xff]  ;;  %v22_v6 = vld [vmem:[%s1731_s2 + $0x8] sm:$0xff]  ;;  %v24_v7 = vld [vmem:[%s1731_s2 + $0x18] sm:$0xff] }
   0x3   :  { %v1255_v8 = vpack.c.bf16 %v1157_v5, %v1155_v2  ;;  %v1237_v9 = vpack.c.bf16 %v24_v7, %v22_v6  ;;  %v21_v10 = vld [vmem:[%s1731_s2] sm:$0xff]  ;;  %v23_v11 = vld [vmem:[%s1731_s2 + $0x10] sm:$0xff]  ;;  %v1160_v12 = vld [vmem:[%s1731_s2 + $0xa8] sm:$0xff] }
   0x4   :  { %1254 = vmatprep.subr.bf16.mxu1 %v1253_v4  ;;  %v1239_v13 = vpack.c.bf16 %v23_v11, %v21_v10  ;;  %v1162_v14 = vld [vmem:[%s1731_s2 + $0xb8] sm:$0xff]  ;;  %v1159_v15 = vld [vmem:[%s1731_s2 + $0xa0] sm:$0xff]  ;;  %v1161_v16 = vld [vmem:[%s1731_s2 + $0xb0] sm:$0xff] }
   0x5   :  { %1256 = vmatpush1.bf16.msra.mxu1 %v1255_v8  ;;  %1238 = vmatprep.subr.bf16.mxu0 %v1237_v9  ;;  %v1257_v17 = vpack.c.bf16 %v1162_v14, %v1160_v12  ;;  %v1259_v18 = vpack.c.bf16 %v1161_v16, %v1159_v15  ;;  %v26_v19 = vld [vmem:[%s1731_s2 + $0x28] sm:$0xff]  ;;  %v28_v20 = vld [vmem:[%s1731_s2 + $0x38] sm:$0xff]  ;;  %v25_v21 = vld [vmem:[%s1731_s2 + $0x20] sm:$0xff] }
   0x6   :  { %1240 = vmatpush1.bf16.msra.mxu0 %v1239_v13  ;;  %v1241_v22 = vpack.c.bf16 %v28_v20, %v26_v19  ;;  %v27_v23 = vld [vmem:[%s1731_s2 + $0x30] sm:$0xff]  ;;  %v1164_v24 = vld [vmem:[%s1731_s2 + $0xc8] sm:$0xff]  ;;  %v1166_v25 = vld [vmem:[%s1731_s2 + $0xd8] sm:$0xff] }
   0x7   :  { %1258 = vmatprep.subr.bf16.mxu1 %v1257_v17  ;;  %v1243_v26 = vpack.c.bf16 %v27_v23, %v25_v21  ;;  %v1261_v27 = vpack.c.bf16 %v1166_v25, %v1164_v24  ;;  %v1163_v28 = vld [vmem:[%s1731_s2 + $0xc0] sm:$0xff]  ;;  %v1165_v29 = vld [vmem:[%s1731_s2 + $0xd0] sm:$0xff]  ;;  %v30_v30 = vld [vmem:[%s1731_s2 + $0x48] sm:$0xff] }
   0x8   :  { %1242 = vmatprep.subr.bf16.mxu0 %v1241_v22  ;;  %v32_v31 = vld [vmem:[%s1731_s2 + $0x58] sm:$0xff]  ;;  %v29_v32 = vld [vmem:[%s1731_s2 + $0x40] sm:$0xff]  ;;  %v31_v33 = vld [vmem:[%s1731_s2 + $0x50] sm:$0xff]  ;;  %v1263_v34 = vpack.c.bf16 %v1165_v29, %v1163_v28 }
   0x9   :  { %1260 = vmatpush1.bf16.msra.mxu1 %v1259_v18  ;;  %v1245_v35 = vpack.c.bf16 %v32_v31, %v30_v30  ;;  %v1168_v36 = vld [vmem:[%s1731_s2 + $0xe8] sm:$0xff]  ;;  %v1170_v37 = vld [vmem:[%s1731_s2 + $0xf8] sm:$0xff]  ;;  %v1167_v38 = vld [vmem:[%s1731_s2 + $0xe0] sm:$0xff]  ;;  %v1247_v39 = vpack.c.bf16 %v31_v33, %v29_v32 }
   0xa   :  { %1244 = vmatpush1.bf16.msra.mxu0 %v1243_v26  ;;  %1262 = vmatprep.subr.bf16.mxu1 %v1261_v27  ;;  %v1265_v40 = vpack.c.bf16 %v1170_v37, %v1168_v36  ;;  %v1169_v41 = vld [vmem:[%s1731_s2 + $0xf0] sm:$0xff]  ;;  %v34_v42 = vld [vmem:[%s1731_s2 + $0x68] sm:$0xff]  ;;  %v36_v43 = vld [vmem:[%s1731_s2 + $0x78] sm:$0xff] }
   0xb   :  { %1246 = vmatprep.subr.bf16.mxu0 %v1245_v35  ;;  %v1249_v44 = vpack.c.bf16 %v36_v43, %v34_v42  ;;  %v33_v45 = vld [vmem:[%s1731_s2 + $0x60] sm:$0xff]  ;;  %v35_v46 = vld [vmem:[%s1731_s2 + $0x70] sm:$0xff]  ;;  %v1176_v47 = vld [vmem:[%s1731_s2 + $0x108] sm:$0xff]  ;;  %v1267_v48 = vpack.c.bf16 %v1169_v41, %v1167_v38 }
   0xc   :  { %v1178_v49 = vld [vmem:[%s1731_s2 + $0x118] sm:$0xff]  ;;  %v1251_v50 = vpack.c.bf16 %v35_v46, %v33_v45  ;;  %v1175_v52 = vld [vmem:[%s1731_s2 + $0x100] sm:$0xff]  ;;  %v1177_v53 = vld [vmem:[%s1731_s2 + $0x110] sm:$0xff] }
   0xd   :  { %1264 = vmatpush1.bf16.msra.mxu1 %v1263_v34  ;;  %v1269_v51 = vpack.c.bf16 %v1178_v49, %v1176_v47  ;;  %v1180_v54 = vld [vmem:[%s1731_s2 + $0x128] sm:$0xff]  ;;  %v1182_v55 = vld [vmem:[%s1731_s2 + $0x138] sm:$0xff]  ;;  %v17_v56 = vld [vmem:[%s1732_s0] sm:$0xff]  ;;  %v1271_v57 = vpack.c.bf16 %v1177_v53, %v1175_v52 }
   0xe   :  { %1248 = vmatpush1.bf16.msra.mxu0 %v1247_v39  ;;  %1266 = vmatprep.subr.bf16.mxu1 %v1265_v40  ;;  %v1273_v58 = vpack.c.bf16 %v1182_v55, %v1180_v54  ;;  %v1179_v59 = vld [vmem:[%s1731_s2 + $0x120] sm:$0xff]  ;;  %v1181_v60 = vld [vmem:[%s1731_s2 + $0x130] sm:$0xff]  ;;  %v1184_v61 = vld [vmem:[%s1731_s2 + $0x148] sm:$0xff] }
   0xf   :  { %1250 = vmatprep.subr.bf16.mxu0 %v1249_v44  ;;  %v1186_v62 = vld [vmem:[%s1731_s2 + $0x158] sm:$0xff]  ;;  %v18_v63 = vld [vmem:[%s1732_s0 + $0x8] sm:$0xff]  ;;  %v1275_v0 = vpack.c.bf16 %v1181_v60, %v1179_v59  ;;  %v1183_v2 = vld [vmem:[%s1731_s2 + $0x140] sm:$0xff] }
  0x10   :  { %v1277_v1 = vpack.c.bf16 %v1186_v62, %v1184_v61  ;;  %v1185_v4 = vld [vmem:[%s1731_s2 + $0x150] sm:$0xff]  ;;  %v1188_v5 = vld [vmem:[%s1731_s2 + $0x168] sm:$0xff]  ;;  %v1190_v6 = vld [vmem:[%s1731_s2 + $0x178] sm:$0xff] }
  0x11   :  { %1268 = vmatpush1.bf16.msra.mxu1 %v1267_v48  ;;  %v19_v7 = vld [vmem:[%s1732_s0 + $0x10] sm:$0xff]  ;;  %v1279_v8 = vpack.c.bf16 %v1185_v4, %v1183_v2  ;;  %v1281_v9 = vpack.c.bf16 %v1190_v6, %v1188_v5  ;;  %v1187_v10 = vld [vmem:[%s1731_s2 + $0x160] sm:$0xff]  ;;  %v20_v12 = vld [vmem:[%s1732_s0 + $0x18] sm:$0xff] }
  0x12   :  { %1252 = vmatpush1.bf16.msra.mxu0 %v1251_v50  ;;  %1309 = vmatprep.subr.bf16.mxu1 %v1269_v51  ;;  %v1189_v11 = vld [vmem:[%s1731_s2 + $0x170] sm:$0xff]  ;;  %v1195_v28 = vld [vmem:[%s1733_s1 + $0x20] sm:$0xff]  ;;  %v1196_v35 = vld [vmem:[%s1733_s1 + $0x28] sm:$0xff] }
  0x13   :  { %1270 = vmatprep.subr.bf16.mxu0 %v1269_v51  ;;  %v1283_v13 = vpack.c.bf16 %v1189_v11, %v1187_v10  ;;  %v1197_v40 = vld [vmem:[%s1733_s1 + $0x30] sm:$0xff]  ;;  %v1198_v45 = vld [vmem:[%s1733_s1 + $0x38] sm:$0xff]  ;;  %v351_v54 = vld [vmem:[%s1733_s1] sm:$0xff] }
  0x14   :  { %1171 = vmatmul.mubr.msk.f32.vlgmr.msra.gmra.mrb[0].mxu1 %vm37_vm0, %v17_v56  ;;  %v352_v55 = vld [vmem:[%s1733_s1 + $0x8] sm:$0xff]  ;;  %v1201_v60 = vld [vmem:[%s1733_s1 + $0x50] sm:$0xff]  ;;  %v1202_v61 = vld [vmem:[%s1733_s1 + $0x58] sm:$0xff] }
  0x15   :  { %1151 = vmatmul.mubr.msk.f32.vlgmr.msra.gmra.mrb[0].mxu0 %vm37_vm0, %v17_v56  ;;  %226 = vmatprep.mubr.f32.mxu1 %v1351_v3  ;;  %v1200_v59 = vld [vmem:[%s1733_s1 + $0x48] sm:$0xff] }
  0x16   :  { %120 = vmatprep.mubr.f32.mxu0 %v1351_v3  ;;  %1272 = vmatpush1.bf16.msra.mxu0 %v1271_v57 }
  0x17   :  { %1313 = vmatpush1.bf16.msra.mxu1 %v1271_v57  ;;  %1274 = vmatprep.subr.bf16.mxu0 %v1273_v58  ;;  %v354_v57 = vld [vmem:[%s1733_s1 + $0x18] sm:$0xff] }
  0x18   :  { %1172 = vmatmul.mubr.msk.f32.gmra.mrb[2].mxu1 %vm37_vm0, %v18_v63  ;;  %1310 = vmatprep.subr.bf16.mxu1 %v1273_v58  ;;  %v1199_v58 = vld [vmem:[%s1733_s1 + $0x40] sm:$0xff] }
  0x19   :  { %1152 = vmatmul.mubr.msk.f32.gmra.mrb[2].mxu0 %vm37_vm0, %v18_v63  ;;  %232 = vmatprep.mubr.f32.mxu1 %v1351_v3 }
  0x1a   :  { %126 = vmatprep.mubr.f32.mxu0 %v1351_v3  ;;  %1276 = vmatpush1.bf16.msra.mxu0 %v1275_v0 }
  0x1b   :  { %1314 = vmatpush1.bf16.msra.mxu1 %v1275_v0  ;;  %1278 = vmatprep.subr.bf16.mxu0 %v1277_v1 }
  0x1c   :  { %1173 = vmatmul.mubr.msk.f32.gmra.mrb[4].mxu1 %vm37_vm0, %v19_v7  ;;  %1311 = vmatprep.subr.bf16.mxu1 %v1277_v1 }
  0x1d   :  { %1153 = vmatmul.mubr.msk.f32.gmra.mrb[4].mxu0 %vm37_vm0, %v19_v7  ;;  %238 = vmatprep.mubr.f32.mxu1 %v1351_v3 }
  0x1e   :  { %132 = vmatprep.mubr.f32.mxu0 %v1351_v3  ;;  %1280 = vmatpush1.bf16.msra.mxu0 %v1279_v8 }
  0x1f   :  { %1315 = vmatpush1.bf16.msra.mxu1 %v1279_v8  ;;  %1282 = vmatprep.subr.bf16.mxu0 %v1281_v9 }
  0x20   :  { %1174 = vmatmul.mubr.msk.f32.gmra.mrb[6].mxu1 %vm37_vm0, %v20_v12  ;;  %1312 = vmatprep.subr.bf16.mxu1 %v1281_v9 }
  0x21   :  { %1154 = vmatmul.mubr.msk.f32.gmra.mrb[6].mxu0 %vm37_vm0, %v20_v12  ;;  %338 = vmatprep.mubr.f32.mxu1 %v1351_v3 }
  0x22   :  { %1284 = vmatpush1.bf16.msra.mxu0 %v1283_v13  ;;  %326 = vmatprep.mubr.f32.mxu0 %v1351_v3 }
  0x23   :  { %1316 = vmatpush1.bf16.msra.mxu1 %v1283_v13 }
  0x25   :  { %1191 = vmatmul.mubr.msk.f32.vlgmr.msra.gmra.mrb[8].mxu0 %vm37_vm0, %v17_v56  ;;  %v353_v56 = vld [vmem:[%s1733_s1 + $0x10] sm:$0xff] }
  0x26   :  { %1193 = vmatmul.mubr.msk.f32.vlgmr.msra.gmra.mrb[8].mxu1 %vm37_vm0, %v19_v7  ;;  %332 = vmatprep.mubr.f32.mxu0 %v1351_v3 }
  0x27   :  { %344 = vmatprep.mubr.f32.mxu1 %v1351_v3 }
  0x29   :  { %1192 = vmatmul.mubr.msk.f32.gmra.mrb[10].mxu0 %vm37_vm0, %v18_v63 }
  0x2a   :  { %1194 = vmatmul.mubr.msk.f32.gmra.mrb[10].mxu1 %vm37_vm0, %v20_v12  ;;  %835 = vmatprep.mubr.f32.mxu0 %v1351_v3 }
  0x2b   :  { %442 = vmatprep.mubr.f32.mxu1 %v1351_v3 }
  0xe7   :  { %v222_v14 = vpop.f32.mrb[0].mxu1 }
  0xe8   :  { %v224_v15 = vpop.f32.mrb[1].mxu1  ;;  %v116_v16 = vpop.f32.mrb[0].mxu0 }
  0xe9   :  { %v118_v17 = vpop.f32.mrb[1].mxu0 }
  0xeb   :  { %v228_v18 = vpop.f32.mrb[2].mxu1 }
  0xec   :  { %v1287_v19 = vpack.c.bf16 %v228_v18, %v222_v14  ;;  %v230_v20 = vpop.f32.mrb[3].mxu1  ;;  %v122_v21 = vpop.f32.mrb[2].mxu0 }
  0xed   :  { %v1285_v22 = vpack.c.bf16 %v230_v20, %v224_v15  ;;  %v1291_v23 = vpack.c.bf16 %v122_v21, %v116_v16  ;;  %v124_v24 = vpop.f32.mrb[3].mxu0 }
  0xee   :  { %v1289_v25 = vpack.c.bf16 %v124_v24, %v118_v17 }
  0xef   :  { %v234_v26 = vpop.f32.mrb[4].mxu1  ;;  %1286 = vmatprep.subr.bf16.mxu1 %v1285_v22 }
  0xf0   :  { %v236_v27 = vpop.f32.mrb[5].mxu1  ;;  %1288 = vmatpush1.bf16.msra.mxu1 %v1287_v19  ;;  %v128_v29 = vpop.f32.mrb[4].mxu0  ;;  %v1352_v19 = vmov 1966171168  }
  0xf1   :  { %1290 = vmatprep.subr.bf16.mxu1 %v1289_v25  ;;  %v130_v30 = vpop.f32.mrb[5].mxu0  ;;  %v707_v20 = vunpack.c.l.s4 %v1352_v19 }
  0xf3   :  { %v240_v31 = vpop.f32.mrb[6].mxu1  ;;  %1203 = vmatmul.mubr.msk.f32.vlgmr.msra.gmra.mrb[12].mxu1 %vm365_vm1, %v1195_v28 }
  0xf4   :  { %v1299_v32 = vpack.c.bf16 %v240_v31, %v234_v26  ;;  %v242_v33 = vpop.f32.mrb[7].mxu1  ;;  %1292 = vmatpush1.bf16.msra.mxu1 %v1291_v23  ;;  %v134_v34 = vpop.f32.mrb[6].mxu0  ;;  %448 = vmatprep.mubr.f32.mxu1 %v1351_v3  ;;  %v709_v26 = vlaneseq }
  0xf5   :  { %v1297_v36 = vpack.c.bf16 %v242_v33, %v236_v27  ;;  %v1303_v37 = vpack.c.bf16 %v134_v34, %v128_v29  ;;  %v136_v38 = vpop.f32.mrb[7].mxu0 }
  0xf6   :  { %v1301_v39 = vpack.c.bf16 %v136_v38, %v130_v30  ;;  %vm1700_vm2 = vcmp.lt.s32.totalorder %v709_v26, 256 }
  0xf7   :  { %1204 = vmatmul.mubr.msk.f32.gmra.mrb[14].mxu1 %vm365_vm1, %v1196_v35  ;;  %1298 = vmatprep.subr.bf16.mxu0 %v1297_v36 }
  0xf8   :  { %1300 = vmatpush1.bf16.msra.mxu0 %v1299_v32  ;;  %454 = vmatprep.mubr.f32.mxu1 %v1351_v3  ;;  %v328_v41 = vpop.f32.mrb[8].mxu0 }
  0xf9   :  { %1302 = vmatprep.subr.bf16.mxu0 %v1301_v39  ;;  %v330_v42 = vpop.f32.mrb[9].mxu0  ;;  %v340_v43 = vpop.f32.mrb[8].mxu1 }
  0xfa   :  { %v342_v44 = vpop.f32.mrb[9].mxu1 }
  0xfb   :  { %1205 = vmatmul.mubr.msk.f32.gmra.mrb[16].mxu1 %vm365_vm1, %v1197_v40  ;;  %1215 = vmatmul.mubr.msk.f32.vlgmr.msra.gmra.mrb[12].mxu0 %vm365_vm1, %v1195_v28 }
  0xfc   :  { %1304 = vmatpush1.bf16.msra.mxu0 %v1303_v37  ;;  %460 = vmatprep.mubr.f32.mxu1 %v1351_v3  ;;  %v334_v46 = vpop.f32.mrb[10].mxu0 }
  0xfd   :  { %841 = vmatprep.mubr.f32.mxu0 %v1351_v3  ;;  %v1295_v47 = vpack.c.bf16 %v334_v46, %v328_v41  ;;  %v336_v48 = vpop.f32.mrb[11].mxu0  ;;  %v346_v49 = vpop.f32.mrb[10].mxu1 }
  0xfe   :  { %v1293_v50 = vpack.c.bf16 %v336_v48, %v330_v42  ;;  %v1307_v51 = vpack.c.bf16 %v346_v49, %v340_v43  ;;  %v348_v52 = vpop.f32.mrb[11].mxu1  ;;  %v710_v42 = vshrl.u32 %v709_v26, 7 }
  0xff   :  { %1206 = vmatmul.mubr.msk.f32.gmra.mrb[18].mxu1 %vm365_vm1, %v1198_v45  ;;  %1216 = vmatmul.mubr.msk.f32.gmra.mrb[14].mxu0 %vm365_vm1, %v1196_v35  ;;  %v1305_v53 = vpack.c.bf16 %v348_v52, %v342_v44 }
 0x100   :  { %543 = vmatprep.mubr.f32.mxu1 %v1351_v3  ;;  %847 = vmatprep.mubr.f32.mxu0 %v1351_v3 }
 0x101   :  { %1294 = vmatprep.subr.bf16.mxu1 %v1293_v50  ;;  %1306 = vmatprep.subr.bf16.mxu0 %v1305_v53 }
 0x103   :  { %1207 = vmatmul.mubr.msk.f32.vlgmr.msra.gmra.mrb[12].mxu1 %vm365_vm1, %v351_v54  ;;  %1217 = vmatmul.mubr.msk.f32.gmra.mrb[16].mxu0 %vm365_vm1, %v1197_v40  ;;  %v708_v40 = vunpack.c.0.s8 %v707_v20 }
 0x104   :  { %549 = vmatprep.mubr.f32.mxu1 %v1351_v3  ;;  %853 = vmatprep.mubr.f32.mxu0 %v1351_v3 }
 0x105   :  { %1296 = vmatpush1.bf16.msra.mxu1 %v1295_v47 }
 0x107   :  { %1208 = vmatmul.mubr.msk.f32.gmra.mrb[14].mxu1 %vm365_vm1, %v352_v55  ;;  %1218 = vmatmul.mubr.msk.f32.gmra.mrb[18].mxu0 %vm365_vm1, %v1198_v45 }
 0x108   :  { %555 = vmatprep.mubr.f32.mxu1 %v1351_v3  ;;  %924 = vmatprep.mubr.f32.mxu0 %v1351_v3 }
 0x10b   :  { %1209 = vmatmul.mubr.msk.f32.gmra.mrb[16].mxu1 %vm365_vm1, %v353_v56  ;;  %1219 = vmatmul.mubr.msk.f32.vlgmr.msra.gmra.mrb[12].mxu0 %vm365_vm1, %v351_v54 }
 0x10c   :  { %1308 = vmatpush1.bf16.msra.mxu0 %v1307_v51  ;;  %561 = vmatprep.mubr.f32.mxu1 %v1351_v3 }
 0x10d   :  { %930 = vmatprep.mubr.f32.mxu0 %v1351_v3 }
 0x10f   :  { %1210 = vmatmul.mubr.msk.f32.gmra.mrb[18].mxu1 %vm365_vm1, %v354_v57  ;;  %1220 = vmatmul.mubr.msk.f32.gmra.mrb[14].mxu0 %vm365_vm1, %v352_v55 }
 0x110   :  { %644 = vmatprep.mubr.f32.mxu1 %v1351_v3  ;;  %936 = vmatprep.mubr.f32.mxu0 %v1351_v3 }
 0x113   :  { %1211 = vmatmul.mubr.msk.f32.vlgmr.msra.gmra.mrb[12].mxu1 %vm365_vm1, %v1199_v58  ;;  %1221 = vmatmul.mubr.msk.f32.gmra.mrb[16].mxu0 %vm365_vm1, %v353_v56 }
 0x114   :  { %650 = vmatprep.mubr.f32.mxu1 %v1351_v3  ;;  %942 = vmatprep.mubr.f32.mxu0 %v1351_v3 }
 0x117   :  { %1212 = vmatmul.mubr.msk.f32.gmra.mrb[14].mxu1 %vm365_vm1, %v1200_v59  ;;  %1222 = vmatmul.mubr.msk.f32.gmra.mrb[18].mxu0 %vm365_vm1, %v354_v57 }
 0x118   :  { %656 = vmatprep.mubr.f32.mxu1 %v1351_v3  ;;  %1013 = vmatprep.mubr.f32.mxu0 %v1351_v3 }
 0x11b   :  { %1213 = vmatmul.mubr.msk.f32.gmra.mrb[16].mxu1 %vm365_vm1, %v1201_v60  ;;  %1223 = vmatmul.mubr.msk.f32.vlgmr.msra.gmra.mrb[12].mxu0 %vm365_vm1, %v1199_v58 }
 0x11c   :  { %662 = vmatprep.mubr.f32.mxu1 %v1351_v3  ;;  %1019 = vmatprep.mubr.f32.mxu0 %v1351_v3 }
 0x11f   :  { %1214 = vmatmul.mubr.msk.f32.gmra.mrb[18].mxu1 %vm365_vm1, %v1202_v61  ;;  %1224 = vmatmul.mubr.msk.f32.gmra.mrb[14].mxu0 %vm365_vm1, %v1200_v59  ;;  %v1690_v59 = vsub.s32 %v708_v40, %v710_v42 }
 0x120   :  { %1025 = vmatprep.mubr.f32.mxu0 %v1351_v3 }
 0x123   :  { %1225 = vmatmul.mubr.msk.f32.gmra.mrb[16].mxu0 %vm365_vm1, %v1201_v60 }
 0x124   :  { %1031 = vmatprep.mubr.f32.mxu0 %v1351_v3 }
 0x127   :  { %1226 = vmatmul.mubr.msk.f32.gmra.mrb[18].mxu0 %vm365_vm1, %v1202_v61 }
 0x1e6   :  { %v646_v62 = vpop.f32.mrb[12].mxu1 }
 0x1e7   :  { %677 = vst [vmem:[%s1734_s3] sm:$0xff] %v646_v62  ;;  %v648_v63 = vpop.f32.mrb[13].mxu1  ;;  %v726_v1 = vmul.f32 %v646_v62, %v646_v62 }
 0x1e8   :  { %678 = vst [vmem:[%s1734_s3 + $0x8] sm:$0xff] %v648_v63  ;;  %v727_v5 = vmul.f32 %v648_v63, %v648_v63 }
 0x1ea   :  { %v652_v0 = vpop.f32.mrb[14].mxu1 }
 0x1eb   :  { %679 = vst [vmem:[%s1734_s3 + $0x10] sm:$0xff] %v652_v0  ;;  %v685_v2 = vadd.f32 %v652_v0, %v646_v62  ;;  %v728_v3 = vmul.f32 %v652_v0, %v652_v0  ;;  %v654_v4 = vpop.f32.mrb[15].mxu1 }
 0x1ec   :  { %680 = vst [vmem:[%s1734_s3 + $0x18] sm:$0xff] %v654_v4  ;;  %v694_v6 = vadd.f32 %v654_v4, %v648_v63  ;;  %v729_v7 = vmul.f32 %v654_v4, %v654_v4 }
 0x1ed   :  { %v734_v8 = vadd.f32 %v728_v3, %v726_v1 }
 0x1ee   :  { %v743_v9 = vadd.f32 %v729_v7, %v727_v5  ;;  %v658_v10 = vpop.f32.mrb[16].mxu1  ;;  %v1015_v11 = vpop.f32.mrb[12].mxu0 }
 0x1ef   :  { %681 = vst [vmem:[%s1734_s3 + $0x20] sm:$0xff] %v658_v10  ;;  %v686_v12 = vadd.f32 %v685_v2, %v658_v10  ;;  %v730_v13 = vmul.f32 %v658_v10, %v658_v10  ;;  %1227 = vst [vmem:[%s1734_s3 + $0x40] sm:$0xff] %v1015_v11  ;;  %v660_v14 = vpop.f32.mrb[17].mxu1  ;;  %v1017_v15 = vpop.f32.mrb[13].mxu0  ;;  %v1093_v21 = vmul.f32 %v1015_v11, %v1015_v11 }
 0x1f0   :  { %682 = vst [vmem:[%s1734_s3 + $0x28] sm:$0xff] %v660_v14  ;;  %v695_v16 = vadd.f32 %v694_v6, %v660_v14  ;;  %v731_v17 = vmul.f32 %v660_v14, %v660_v14  ;;  %1228 = vst [vmem:[%s1734_s3 + $0x48] sm:$0xff] %v1017_v15  ;;  %v1094_v23 = vmul.f32 %v1017_v15, %v1017_v15 }
 0x1f1   :  { %v735_v18 = vadd.f32 %v734_v8, %v730_v13 }
 0x1f2   :  { %v744_v22 = vadd.f32 %v743_v9, %v731_v17  ;;  %v664_v24 = vpop.f32.mrb[18].mxu1  ;;  %v1021_v25 = vpop.f32.mrb[14].mxu0 }
 0x1f3   :  { %683 = vst [vmem:[%s1734_s3 + $0x30] sm:$0xff] %v664_v24  ;;  %v687_v27 = vadd.f32 %v686_v12, %v664_v24  ;;  %v732_v28 = vmul.f32 %v664_v24, %v664_v24  ;;  %1229 = vst [vmem:[%s1734_s3 + $0x50] sm:$0xff] %v1021_v25  ;;  %v1055_v29 = vadd.f32 %v1021_v25, %v1015_v11  ;;  %v666_v31 = vpop.f32.mrb[19].mxu1  ;;  %v1023_v32 = vpop.f32.mrb[15].mxu0 }
 0x1f4   :  { %v1095_v30 = vmul.f32 %v1021_v25, %v1021_v25  ;;  %684 = vst [vmem:[%s1734_s3 + $0x38] sm:$0xff] %v666_v31  ;;  %v696_v33 = vadd.f32 %v695_v16, %v666_v31  ;;  %v733_v34 = vmul.f32 %v666_v31, %v666_v31  ;;  %1230 = vst [vmem:[%s1734_s3 + $0x58] sm:$0xff] %v1023_v32 }
 0x1f5   :  { %v1064_v35 = vadd.f32 %v1023_v32, %v1017_v15  ;;  %v1096_v36 = vmul.f32 %v1023_v32, %v1023_v32  ;;  %v688_v37 = vrot.slane %v687_v27, 4  ;;  %v736_v38 = vadd.f32 %v735_v18, %v732_v28 }
 0x1f6   :  { %v1101_v39 = vadd.f32 %v1095_v30, %v1093_v21  ;;  %v697_v41 = vrot.slane %v696_v33, 4  ;;  %v745_v43 = vadd.f32 %v744_v22, %v733_v34  ;;  %v1027_v45 = vpop.f32.mrb[16].mxu0 }
 0x1f7   :  { %v1110_v44 = vadd.f32 %v1096_v36, %v1094_v23  ;;  %v689_v46 = vadd.f32 %v688_v37, %v687_v27  ;;  %v737_v47 = vrot.slane %v736_v38, 4  ;;  %1231 = vst [vmem:[%s1734_s3 + $0x60] sm:$0xff] %v1027_v45  ;;  %v1056_v48 = vadd.f32 %v1055_v29, %v1027_v45  ;;  %v1029_v50 = vpop.f32.mrb[17].mxu0 }
 0x1f8   :  { %v1097_v49 = vmul.f32 %v1027_v45, %v1027_v45  ;;  %v698_v51 = vadd.f32 %v697_v41, %v696_v33  ;;  %v746_v52 = vrot.slane %v745_v43, 4  ;;  %1232 = vst [vmem:[%s1734_s3 + $0x68] sm:$0xff] %v1029_v50  ;;  %v1065_v53 = vadd.f32 %v1064_v35, %v1029_v50 }
 0x1f9   :  { %v1098_v54 = vmul.f32 %v1029_v50, %v1029_v50  ;;  %v690_v55 = vrot.slane %v689_v46, 2  ;;  %v738_v56 = vadd.f32 %v737_v47, %v736_v38 }
 0x1fa   :  { %v1102_v57 = vadd.f32 %v1101_v39, %v1097_v49  ;;  %v699_v58 = vrot.slane %v698_v51, 2  ;;  %v747_v60 = vadd.f32 %v746_v52, %v745_v43  ;;  %v1033_v62 = vpop.f32.mrb[18].mxu0 }
 0x1fb   :  { %v1111_v61 = vadd.f32 %v1110_v44, %v1098_v54  ;;  %v691_v63 = vadd.f32 %v690_v55, %v689_v46  ;;  %v739_v0 = vrot.slane %v738_v56, 2  ;;  %1233 = vst [vmem:[%s1734_s3 + $0x70] sm:$0xff] %v1033_v62  ;;  %v1057_v1 = vadd.f32 %v1056_v48, %v1033_v62  ;;  %v1035_v3 = vpop.f32.mrb[19].mxu0 }
 0x1fc   :  { %v1099_v2 = vmul.f32 %v1033_v62, %v1033_v62  ;;  %v700_v4 = vadd.f32 %v699_v58, %v698_v51  ;;  %v748_v5 = vrot.slane %v747_v60, 2  ;;  %1234 = vst [vmem:[%s1734_s3 + $0x78] sm:$0xff] %v1035_v3  ;;  %v1066_v6 = vadd.f32 %v1065_v53, %v1035_v3 }
 0x1fd   :  { %v1100_v7 = vmul.f32 %v1035_v3, %v1035_v3  ;;  %v692_v8 = vrot.slane %v691_v63, 1  ;;  %v740_v9 = vadd.f32 %v739_v0, %v738_v56  ;;  %v1058_v10 = vrot.slane %v1057_v1, 4 }
 0x1fe   :  { %v1103_v11 = vadd.f32 %v1102_v57, %v1099_v2  ;;  %v701_v12 = vrot.slane %v700_v4, 1  ;;  %v749_v13 = vadd.f32 %v748_v5, %v747_v60  ;;  %v1067_v14 = vrot.slane %v1066_v6, 4 }
 0x1ff   :  { %v1112_v15 = vadd.f32 %v1111_v61, %v1100_v7  ;;  %v693_v16 = vadd.f32 %v692_v8, %v691_v63  ;;  %v741_v17 = vrot.slane %v740_v9, 1  ;;  %v1059_v18 = vadd.f32 %v1058_v10, %v1057_v1 }
 0x200   :  { %v1104_v19 = vrot.slane %v1103_v11, 4  ;;  %v702_v20 = vadd.f32 %v701_v12, %v700_v4  ;;  %v750_v21 = vrot.slane %v749_v13, 1  ;;  %v1068_v22 = vadd.f32 %v1067_v14, %v1066_v6 }
 0x201   :  { %v1113_v23 = vrot.slane %v1112_v15, 4  ;;  %v742_v24 = vadd.f32 %v741_v17, %v740_v9  ;;  %v1060_v25 = vrot.slane %v1059_v18, 2 }
 0x202   :  { %v1105_v27 = vadd.f32 %v1104_v19, %v1103_v11  ;;  %v705_v28 = vcombine.low %v693_v16, %v702_v20  ;;  %v751_v29 = vadd.f32 %v750_v21, %v749_v13  ;;  %v1069_v30 = vrot.slane %v1068_v22, 2 }
 0x203   :  { %v1114_v31 = vadd.f32 %v1113_v23, %v1112_v15  ;;  %v1061_v32 = vadd.f32 %v1060_v25, %v1059_v18 }
 0x204   :  { %v1106_v33 = vrot.slane %v1105_v27, 2  ;;  %v712_v34 = vrot.slane %v705_v28, %v1690_v59  ;;  %v754_v35 = vcombine.low %v742_v24, %v751_v29  ;;  %v1070_v36 = vadd.f32 %v1069_v30, %v1068_v22 }
 0x205   :  { %v1115_v37 = vrot.slane %v1114_v31, 2  ;;  %v1062_v39 = vrot.slane %v1061_v32, 1 }
 0x206   :  { %v1107_v40 = vadd.f32 %v1106_v33, %v1105_v27  ;;  %v719_v41 = vrot.slane %v712_v34, %v1690_v59  ;;  %v761_v42 = vrot.slane %v754_v35, %v1690_v59  ;;  %v1071_v43 = vrot.slane %v1070_v36, 1 }
 0x207   :  { %v1116_v44 = vadd.f32 %v1115_v37, %v1114_v31  ;;  %v1063_v45 = vadd.f32 %v1062_v39, %v1061_v32 }
 0x208   :  { %v1108_v46 = vrot.slane %v1107_v40, 1  ;;  %725 = vst.msk [vmem:[%s1735_s4] sm:$0x3] %vm1700_vm2, %v719_v41  ;;  %v768_v26 = vrot.slane %v761_v42, %v1690_v59  ;;  %v1072_v47 = vadd.f32 %v1071_v43, %v1070_v36 }
 0x209   :  { %v1117_v48 = vrot.slane %v1116_v44, 1 }
 0x20a   :  { %v1109_v49 = vadd.f32 %v1108_v46, %v1107_v40  ;;  %770 = vst.msk [vmem:[%s1736_s5] sm:$0x3] %vm1700_vm2, %v768_v26  ;;  %v1075_v50 = vcombine.low %v1063_v45, %v1072_v47 }
 0x20b   :  { %v1118_v51 = vadd.f32 %v1117_v48, %v1116_v44 }
 0x20c   :  { %v1082_v52 = vrot.slane %v1075_v50, %v1690_v59 }
 0x20d   :  { %v1121_v53 = vcombine.low %v1109_v49, %v1118_v51 }
 0x20e   :  { %v1089_v54 = vrot.slane %v1082_v52, %v1690_v59 }
 0x20f   :  { %v1128_v55 = vrot.slane %v1121_v53, %v1690_v59 }
 0x210   :  { %1235 = vst.msk [vmem:[%s1735_s4 + $0x2] sm:$0x3] %vm1700_vm2, %v1089_v54 }
 0x211   :  { %v1135_v56 = vrot.slane %v1128_v55, %v1690_v59 }
 0x213   :  { %1236 = vst.msk [vmem:[%s1736_s5 + $0x2] sm:$0x3] %vm1700_vm2, %v1135_v56 }

</bundles_post_ra>
